<compile_context>
chip_gen: v7x
topology: tpu7x:2x2x1
jax: 0.10.0
libtpu: 0.0.40
codegen_flags: <defaults>
</compile_context>

<pallas_src>
import jax
import jax.numpy as jnp
from jax.experimental import pallas as pl
from jax.experimental.pallas import tpu as pltpu


def _highway_kernel(x_ref, wl_ref, bl_ref, wg_ref, bg_ref, o_ref):
    # x_ref : (TM, D)   flattened input rows
    # wl_ref: (D, D)    transform weight, already transposed to (in, out)
    # bl_ref: (1, D)    transform bias (f32)
    # wg_ref: (D, D)    gate weight, (in, out)
    # bg_ref: (1, D)    gate bias (f32)
    # o_ref : (TM, D)
    x = x_ref[...]
    x_f32 = x.astype(jnp.float32)

    # Transform branch: one full-K MXU matmul, f32 accumulation.
    trans = jnp.dot(x, wl_ref[...], preferred_element_type=jnp.float32)
    trans = jnp.maximum(trans + bl_ref[...], 0.0)            # ReLU (VPU)

    # Gate branch: second MXU matmul + sigmoid (exp on EUP slot).
    g = jnp.dot(x, wg_ref[...], preferred_element_type=jnp.float32)
    g = g + bg_ref[...]
    gate = 1.0 / (1.0 + jnp.exp(-g))                         # sigmoid

    out = gate * trans + (1.0 - gate) * x_f32
    o_ref[...] = out.astype(o_ref.dtype)


def _round_up(a, b):
    return (a + b - 1) // b * b


def highway_forward(x, w_lin, b_lin, w_gate, b_gate, *, block_m=256):
    """Highway layer forward.

    x       : [..., D]  (any number of leading dims)
    w_lin   : (D, D)  PyTorch nn.Linear layout (out, in)
    b_lin   : (D,)
    w_gate  : (D, D)  PyTorch nn.Linear layout (out, in)
    b_gate  : (D,)
    Returns an array with the same shape and dtype as x.
    """
    orig_shape = x.shape
    D = orig_shape[-1]
    M = 1
    for s in orig_shape[:-1]:
        M *= s
    x2 = x.reshape(M, D)

    # Row-tile size: multiple of 8 (sublane), capped at block_m. For the shapes
    # here a full tile of weights + x + out stays far below even v7x's 64 MiB
    # VMEM, so no explicit vmem_limit_bytes is required.
    tm = min(block_m, _round_up(M, 8))
    m_pad = _round_up(M, tm)
    if m_pad != M:
        x2 = jnp.pad(x2, ((0, m_pad - M), (0, 0)))

    # nn.Linear computes x @ W.T + b -> pre-transpose so the kernel does x @ W.
    wl = jnp.transpose(w_lin).astype(x.dtype)
    wg = jnp.transpose(w_gate).astype(x.dtype)
    bl = b_lin.reshape(1, D).astype(jnp.float32)
    bg = b_gate.reshape(1, D).astype(jnp.float32)

    out = pl.pallas_call(
        _highway_kernel,
        out_shape=jax.ShapeDtypeStruct((m_pad, D), x.dtype),
        grid_spec=pltpu.PrefetchScalarGridSpec(
            num_scalar_prefetch=0,
            grid=(m_pad // tm,),
            in_specs=[
                pl.BlockSpec((tm, D), lambda i: (i, 0)),
                pl.BlockSpec((D, D), lambda i: (0, 0)),   # resident weights
                pl.BlockSpec((1, D), lambda i: (0, 0)),
                pl.BlockSpec((D, D), lambda i: (0, 0)),
                pl.BlockSpec((1, D), lambda i: (0, 0)),
            ],
            out_specs=pl.BlockSpec((tm, D), lambda i: (i, 0)),
        ),
        compiler_params=pltpu.CompilerParams(
            dimension_semantics=("parallel",)),
    )(x2, wl, bl, wg, bg)

    if m_pad != M:
        out = out[:M]
    return out.reshape(orig_shape)


def _reference(x, w_lin, b_lin, w_gate, b_gate):
    hp = jax.lax.Precision.HIGHEST
    trans = jax.nn.relu(
        jnp.einsum("...i,oi->...o", x, w_lin, precision=hp) + b_lin)
    gate = jax.nn.sigmoid(
        jnp.einsum("...i,oi->...o", x, w_gate, precision=hp) + b_gate)
    return gate * trans + (1.0 - gate) * x


if __name__ == "__main__":
    key = jax.random.PRNGKey(0)
    k1, k2, k3, k4, k5 = jax.random.split(key, 5)

    # Small shapes consistent with the module: batch=2, seq=8, hidden(size)=128
    # (128 chosen so the working layout is fully lane-dense).
    B, S, D = 2, 8, 128
    x = jax.random.normal(k1, (B, S, D), dtype=jnp.float32)
    w_lin = jax.random.normal(k2, (D, D), dtype=jnp.float32) / (D ** 0.5)
    b_lin = jax.random.normal(k3, (D,), dtype=jnp.float32) * 0.1
    w_gate = jax.random.normal(k4, (D, D), dtype=jnp.float32) / (D ** 0.5)
    b_gate = jnp.zeros((D,), dtype=jnp.float32)              # bias_init = 0.0

    out = highway_forward(x, w_lin, b_lin, w_gate, b_gate)
    out = jax.block_until_ready(out)
    ref = _reference(x, w_lin, b_lin, w_gate, b_gate)
    assert out.shape == ref.shape, (out.shape, ref.shape)
    assert jnp.allclose(out, ref, atol=1e-4, rtol=1e-4), "mismatch vs reference"

    # Second check: 2-D input, row count not a multiple of the tile, narrower
    # hidden size -> exercises row padding, multi-step grid, non-128 lane dim.
    M2, D2 = 200, 64
    x2 = jax.random.normal(k5, (M2, D2), dtype=jnp.float32)
    kk = jax.random.split(k5, 4)
    w_lin2 = jax.random.normal(kk[0], (D2, D2), dtype=jnp.float32) / (D2 ** 0.5)
    b_lin2 = jax.random.normal(kk[1], (D2,), dtype=jnp.float32) * 0.1
    w_gate2 = jax.random.normal(kk[2], (D2, D2), dtype=jnp.float32) / (D2 ** 0.5)
    b_gate2 = jnp.full((D2,), -1.0, dtype=jnp.float32)        # bias_init = -1.0

    out2 = highway_forward(x2, w_lin2, b_lin2, w_gate2, b_gate2, block_m=64)
    out2 = jax.block_until_ready(out2)
    ref2 = _reference(x2, w_lin2, b_lin2, w_gate2, b_gate2)
    assert out2.shape == ref2.shape, (out2.shape, ref2.shape)
    assert jnp.allclose(out2, ref2, atol=1e-4, rtol=1e-4), "mismatch (case 2)"

    print("KERNEL_OK")
</pallas_src>

<mosaic_0001>
module attributes {stable_mosaic.version = 11 : i64} {
  func.func @_highway_kernel(%arg0: i32, %arg1: memref<16x128xf32, #tpu.memory_space<vmem>>, %arg2: memref<128x128xf32, #tpu.memory_space<vmem>>, %arg3: memref<1x128xf32, #tpu.memory_space<vmem>>, %arg4: memref<128x128xf32, #tpu.memory_space<vmem>>, %arg5: memref<1x128xf32, #tpu.memory_space<vmem>>, %arg6: memref<16x128xf32, #tpu.memory_space<vmem>>) attributes {dimension_semantics = [#tpu.dimension_semantics<parallel>], iteration_bounds = array<i64: 1>, scalar_prefetch = 0 : i64, scratch_operands = 0 : i64, tpu.core_type = #tpu.core_type<tc>, window_params = [{transform_indices = @transform_0, window_bounds = array<i64: 16, 128>}, {pipeline_mode = #tpu.pipeline_mode<synchronous>, transform_indices = @transform_1, window_bounds = array<i64: 128, 128>}, {pipeline_mode = #tpu.pipeline_mode<synchronous>, transform_indices = @transform_2, window_bounds = array<i64: 1, 128>}, {pipeline_mode = #tpu.pipeline_mode<synchronous>, transform_indices = @transform_3, window_bounds = array<i64: 128, 128>}, {pipeline_mode = #tpu.pipeline_mode<synchronous>, transform_indices = @transform_4, window_bounds = array<i64: 1, 128>}, {transform_indices = @transform_5, window_bounds = array<i64: 16, 128>}]} {
    %c0 = arith.constant 0 : index
    %c0_0 = arith.constant 0 : index
    %0 = vector.load %arg1[%c0, %c0_0] : memref<16x128xf32, #tpu.memory_space<vmem>>, vector<16x128xf32>
    %c0_1 = arith.constant 0 : index
    %c0_2 = arith.constant 0 : index
    %1 = vector.load %arg2[%c0_1, %c0_2] : memref<128x128xf32, #tpu.memory_space<vmem>>, vector<128x128xf32>
    %cst = arith.constant dense<0.000000e+00> : vector<16x128xf32>
    %2 = tpu.matmul %0, %1, %cst {dimension_numbers = #tpu.dot_dimension_numbers<[1], [0], [0], [1], [0, 0, 1, 1], [], []>} : vector<16x128xf32>, vector<128x128xf32>, vector<16x128xf32> -> vector<16x128xf32>
    %c0_3 = arith.constant 0 : index
    %c0_4 = arith.constant 0 : index
    %3 = vector.load %arg3[%c0_3, %c0_4] : memref<1x128xf32, #tpu.memory_space<vmem>>, vector<1x128xf32>
    %4 = vector.broadcast %3 : vector<1x128xf32> to vector<16x128xf32>
    %5 = arith.addf %2, %4 : vector<16x128xf32>
    %cst_5 = arith.constant 0.000000e+00 : f32
    %6 = vector.broadcast %cst_5 : f32 to vector<16x128xf32>
    %7 = arith.maximumf %5, %6 : vector<16x128xf32>
    %c0_6 = arith.constant 0 : index
    %c0_7 = arith.constant 0 : index
    %8 = vector.load %arg4[%c0_6, %c0_7] : memref<128x128xf32, #tpu.memory_space<vmem>>, vector<128x128xf32>
    %cst_8 = arith.constant dense<0.000000e+00> : vector<16x128xf32>
    %9 = tpu.matmul %0, %8, %cst_8 {dimension_numbers = #tpu.dot_dimension_numbers<[1], [0], [0], [1], [0, 0, 1, 1], [], []>} : vector<16x128xf32>, vector<128x128xf32>, vector<16x128xf32> -> vector<16x128xf32>
    %c0_9 = arith.constant 0 : index
    %c0_10 = arith.constant 0 : index
    %10 = vector.load %arg5[%c0_9, %c0_10] : memref<1x128xf32, #tpu.memory_space<vmem>>, vector<1x128xf32>
    %11 = vector.broadcast %10 : vector<1x128xf32> to vector<16x128xf32>
    %12 = arith.addf %9, %11 : vector<16x128xf32>
    %cst_11 = arith.constant 0.000000e+00 : f32
    %13 = vector.broadcast %cst_11 : f32 to vector<16x128xf32>
    %14 = arith.subf %13, %12 : vector<16x128xf32>
    %15 = math.exp %14 : vector<16x128xf32>
    %cst_12 = arith.constant 1.000000e+00 : f32
    %16 = vector.broadcast %cst_12 : f32 to vector<16x128xf32>
    %17 = arith.addf %16, %15 : vector<16x128xf32>
    %cst_13 = arith.constant 1.000000e+00 : f32
    %18 = vector.broadcast %cst_13 : f32 to vector<16x128xf32>
    %19 = arith.divf %18, %17 : vector<16x128xf32>
    %20 = arith.mulf %19, %7 : vector<16x128xf32>
    %cst_14 = arith.constant 1.000000e+00 : f32
    %21 = vector.broadcast %cst_14 : f32 to vector<16x128xf32>
    %22 = arith.subf %21, %19 : vector<16x128xf32>
    %23 = arith.mulf %22, %0 : vector<16x128xf32>
    %24 = arith.addf %20, %23 : vector<16x128xf32>
    %c0_15 = arith.constant 0 : index
    %c0_16 = arith.constant 0 : index
    %25 = vector.load %arg6[%c0_15, %c0_16] : memref<16x128xf32, #tpu.memory_space<vmem>>, vector<16x128xf32>
    tpu.vector_store %arg6[%c0_15, %c0_16], %24 {strides = array<i32>} : memref<16x128xf32, #tpu.memory_space<vmem>>, vector<16x128xf32>,
    return
  }
  func.func @transform_0(%arg0: i32) -> (i32, i32) {
    %c0_i32 = arith.constant 0 : i32
    %c0_i32_0 = arith.constant 0 : i32
    return %arg0, %c0_i32 : i32, i32
  }
  func.func @transform_1(%arg0: i32) -> (i32, i32) {
    %c0_i32 = arith.constant 0 : i32
    %c0_i32_0 = arith.constant 0 : i32
    %c0_i32_1 = arith.constant 0 : i32
    return %c0_i32, %c0_i32_0 : i32, i32
  }
  func.func @transform_2(%arg0: i32) -> (i32, i32) {
    %c0_i32 = arith.constant 0 : i32
    %c0_i32_0 = arith.constant 0 : i32
    %c0_i32_1 = arith.constant 0 : i32
    return %c0_i32, %c0_i32_0 : i32, i32
  }
  func.func @transform_3(%arg0: i32) -> (i32, i32) {
    %c0_i32 = arith.constant 0 : i32
    %c0_i32_0 = arith.constant 0 : i32
    %c0_i32_1 = arith.constant 0 : i32
    return %c0_i32, %c0_i32_0 : i32, i32
  }
  func.func @transform_4(%arg0: i32) -> (i32, i32) {
    %c0_i32 = arith.constant 0 : i32
    %c0_i32_0 = arith.constant 0 : i32
    %c0_i32_1 = arith.constant 0 : i32
    return %c0_i32, %c0_i32_0 : i32, i32
  }
  func.func @transform_5(%arg0: i32) -> (i32, i32) {
    %c0_i32 = arith.constant 0 : i32
    %c0_i32_0 = arith.constant 0 : i32
    return %arg0, %c0_i32 : i32, i32
  }
}

</mosaic_0001>

<bundles_post_ra>
// kernel: tpu_custom_call.1
= control target key start
LH: loop header
LB: loop body
LE: loop exit
PB: predicated region body
PF: predicated region fallthrough
CT: control target
= control target key end

     0   :  { %10 = vsyncpa [#allocation3], 0  ;;  %s696_s0 = inlined_call_operand.hbm [shape: f32[16,128], index: 0, kind: input, shape index: {}]   ;;  %s697_s1 = inlined_call_operand.hbm [shape: f32[128,128], index: 1, kind: input, shape index: {}]   ;;  %s698_s2 = inlined_call_operand.vmem [shape: f32[1,128], index: 2, kind: input, shape index: {}]   ;;  %s699_s3 = inlined_call_operand.hbm [shape: f32[128,128], index: 3, kind: input, shape index: {}]   ;;  %s700_s4 = inlined_call_operand.vmem [shape: f32[1,128], index: 4, kind: input, shape index: {}]   ;;  %s701_s5 = inlined_call_operand.hbm [shape: f32[16,128], index: 5, kind: output, shape index: {}]  }
   0x1   :  { %11 = vsyncpa [#allocation6], 0 }
   0x2   :  { %12 = vsyncpa [#allocation4], 0  ;;  %s582_s18 = smov [#allocation5]   ;;  %s583_s20 = smov [#allocation2]  }
   0x3   :  { %s30_s19 = sshll.u32 %s582_s18, 4  ;;  %s18_s21 = sshll.u32 %s583_s20, 4  ;;  %s31_s19 = int_to_ptr.vmem [resolvable:$true] %s30_s19  ;;  %s618_s21 = int_to_ptr.vmem [resolvable:$true] %s18_s21 }
   0x4   :  { %s488_s24 = scalar_lea.hbm %s697_s1, 2048 }
   0x5   :  { %p489_p0 = scmp.ne.s32.totalorder %s697_s1, %s488_s24  ;;  %p492_p1 = scmp.lt.u32.totalorder %s488_s24, %s697_s1 }
   0x7   :  { %p494_p2 = pnand %p492_p1, %p489_p0 }
   0x9   :  { %497 = shalt.err (!%p494_p2)
}
   0xa   :  { %s498_s29 = scalar_lea.vmem %s31_s19, 2048  ;;  %p503_p4 = scmp.lt.s32.totalorder %s31_s19, %s31_s19 }
   0xb   :  { %p499_p3 = scmp.ne.s32.totalorder %s31_s19, %s498_s29  ;;  %p504_p5 = scmp.lt.s32.totalorder %s498_s29, %s498_s29 }
   0xd   :  { %p505_p6 = por %p504_p5, %p503_p4 }
   0xf   :  { %p506_p7 = pnand %p505_p6, %p499_p3 }
  0x11   :  { %509 = shalt.err (!%p506_p7)
}
  0x12   :  { %s584_s30 = smov 128   ;;  %s585_s6 = smov 8  }
  0x13   :  { %36 = dma.hbm_to_vmem [thread:$0]  %s697_s1, 2048, %s31_s19, [#allocation6], %s584_s30, %s584_s30, %s585_s6  }
  0x14   :  { %s510_s11 = scalar_lea.hbm %s696_s0, 256 }
  0x15   :  { %p511_p8 = scmp.ne.s32.totalorder %s696_s0, %s510_s11  ;;  %p514_p9 = scmp.lt.u32.totalorder %s510_s11, %s696_s0 }
  0x17   :  { %p516_p10 = pnand %p514_p9, %p511_p8 }
  0x19   :  { %519 = shalt.err (!%p516_p10)
}
  0x1a   :  { %s520_s16 = scalar_lea.vmem %s618_s21, 256  ;;  %p525_p12 = scmp.lt.s32.totalorder %s618_s21, %s618_s21 }
  0x1b   :  { %p521_p11 = scmp.ne.s32.totalorder %s618_s21, %s520_s16  ;;  %p526_p13 = scmp.lt.s32.totalorder %s520_s16, %s520_s16 }
  0x1d   :  { %p527_p0 = por %p526_p13, %p525_p12 }
  0x1f   :  { %p528_p1 = pnand %p527_p0, %p521_p11 }
  0x21   :  { %531 = shalt.err (!%p528_p1)
}
  0x22   :  { %24 = dma.hbm_to_vmem [thread:$0]  %s696_s0, 256, %s618_s21, [#allocation3], %s584_s30, %s584_s30, %s585_s6  }
  0x23   :  { %s586_s18 = smov [#allocation7]   ;;  %s532_s23 = scalar_lea.hbm %s699_s3, 2048 }
  0x24   :  { %s44_s19 = sshll.u32 %s586_s18, 4  ;;  %p533_p2 = scmp.ne.s32.totalorder %s699_s3, %s532_s23  ;;  %s45_s19 = int_to_ptr.vmem [resolvable:$true] %s44_s19 }
  0x25   :  { %p536_p3 = scmp.lt.u32.totalorder %s532_s23, %s699_s3 }
  0x27   :  { %p538_p4 = pnand %p536_p3, %p533_p2 }
  0x29   :  { %541 = shalt.err (!%p538_p4)
}
  0x2a   :  { %s542_s28 = scalar_lea.vmem %s45_s19, 2048  ;;  %p547_p6 = scmp.lt.s32.totalorder %s45_s19, %s45_s19 }
  0x2b   :  { %p543_p5 = scmp.ne.s32.totalorder %s45_s19, %s542_s28  ;;  %p548_p7 = scmp.lt.s32.totalorder %s542_s28, %s542_s28 }
  0x2d   :  { %p549_p8 = por %p548_p7, %p547_p6 }
  0x2f   :  { %p550_p9 = pnand %p549_p8, %p543_p5 }
  0x31   :  { %553 = shalt.err (!%p550_p9)
}
  0x32   :  { %50 = dma.hbm_to_vmem [thread:$0]  %s699_s3, 2048, %s45_s19, [#allocation6], %s584_s30, %s584_s30, %s585_s6  }
  0x33   :  { %576 = dma.done.wait [#allocation3], 256  }
  0x34   :  { %577 = vsyncadd [#allocation3], 4294967040 }
  0x35   :  { %578 = dma.done.wait [#allocation6], 4096  }
  0x36   :  { %579 = vsyncadd [#allocation6], 4294963200  ;;  %v164_v0 = vld [vmem:[#allocation7] sm:$0xff]  ;;  %v165_v1 = vld [vmem:[#allocation7 + $0x8] sm:$0xff] }
  0x37   :  { %v166_v2 = vld [vmem:[#allocation7 + $0x10] sm:$0xff]  ;;  %v442_v3 = vpack.c.bf16 %v165_v1, %v164_v0  ;;  %v167_v4 = vld [vmem:[#allocation7 + $0x18] sm:$0xff]  ;;  %v168_v6 = vld [vmem:[#allocation7 + $0x20] sm:$0xff] }
  0x38   :  { %v446_v5 = vpack.c.bf16 %v167_v4, %v166_v2  ;;  %v169_v7 = vld [vmem:[#allocation7 + $0x28] sm:$0xff]  ;;  %v64_v8 = vld [vmem:[#allocation5] sm:$0xff]  ;;  %v170_v10 = vld [vmem:[#allocation7 + $0x30] sm:$0xff] }
  0x39   :  { %443 = vmatprep.subr.bf16.mxu1 %v442_v3  ;;  %v450_v9 = vpack.c.bf16 %v169_v7, %v168_v6  ;;  %v171_v11 = vld [vmem:[#allocation7 + $0x38] sm:$0xff]  ;;  %v65_v12 = vld [vmem:[#allocation5 + $0x8] sm:$0xff]  ;;  %v66_v14 = vld [vmem:[#allocation5 + $0x10] sm:$0xff] }
  0x3a   :  { %445 = vmatpush3.bf16.msra.mxu1 %v442_v3  ;;  %v410_v13 = vpack.c.bf16 %v65_v12, %v64_v8  ;;  %v67_v15 = vld [vmem:[#allocation5 + $0x18] sm:$0xff]  ;;  %v670_v16 = vld [vmem:[#allocation2] sm:$0xff]  ;;  %v68_v18 = vld [vmem:[#allocation5 + $0x20] sm:$0xff]  ;;  %v454_v20 = vpack.c.bf16 %v171_v11, %v170_v10 }
  0x3b   :  { %447 = vmatprep.subr.bf16.mxu1 %v446_v5  ;;  %v414_v17 = vpack.c.bf16 %v67_v15, %v66_v14  ;;  %407 = vmatprep.mubr.f32.mxu1 %v670_v16  ;;  %v69_v19 = vld [vmem:[#allocation5 + $0x28] sm:$0xff]  ;;  %v172_v21 = vld [vmem:[#allocation7 + $0x40] sm:$0xff]  ;;  %v70_v24 = vld [vmem:[#allocation5 + $0x30] sm:$0xff] }
  0x3c   :  { %372 = vmatprep.mubr.f32.mxu0 %v670_v16  ;;  %411 = vmatprep.subr.bf16.mxu0 %v410_v13  ;;  %v173_v22 = vld [vmem:[#allocation7 + $0x48] sm:$0xff]  ;;  %v418_v23 = vpack.c.bf16 %v69_v19, %v68_v18  ;;  %v71_v25 = vld [vmem:[#allocation5 + $0x38] sm:$0xff]  ;;  %v174_v27 = vld [vmem:[#allocation7 + $0x50] sm:$0xff] }
  0x3d   :  { %413 = vmatpush3.bf16.msra.mxu0 %v410_v13  ;;  %v458_v26 = vpack.c.bf16 %v173_v22, %v172_v21  ;;  %v175_v28 = vld [vmem:[#allocation7 + $0x58] sm:$0xff]  ;;  %v422_v29 = vpack.c.bf16 %v71_v25, %v70_v24  ;;  %v72_v30 = vld [vmem:[#allocation5 + $0x40] sm:$0xff]  ;;  %v73_v31 = vld [vmem:[#allocation5 + $0x48] sm:$0xff] }
  0x3e   :  { %449 = vmatpush3.bf16.msra.mxu1 %v446_v5  ;;  %415 = vmatprep.subr.bf16.mxu0 %v414_v17  ;;  %v462_v32 = vpack.c.bf16 %v175_v28, %v174_v27  ;;  %v176_v33 = vld [vmem:[#allocation7 + $0x60] sm:$0xff]  ;;  %v177_v34 = vld [vmem:[#allocation7 + $0x68] sm:$0xff]  ;;  %v426_v35 = vpack.c.bf16 %v73_v31, %v72_v30  ;;  %v74_v36 = vld [vmem:[#allocation5 + $0x50] sm:$0xff] }
  0x3f   :  { %451 = vmatprep.subr.bf16.mxu1 %v450_v9  ;;  %v75_v37 = vld [vmem:[#allocation5 + $0x58] sm:$0xff]  ;;  %v466_v38 = vpack.c.bf16 %v177_v34, %v176_v33  ;;  %v178_v39 = vld [vmem:[#allocation7 + $0x70] sm:$0xff]  ;;  %v76_v42 = vld [vmem:[#allocation5 + $0x60] sm:$0xff] }
  0x40   :  { %v179_v40 = vld [vmem:[#allocation7 + $0x78] sm:$0xff]  ;;  %v430_v41 = vpack.c.bf16 %v75_v37, %v74_v36  ;;  %v77_v43 = vld [vmem:[#allocation5 + $0x68] sm:$0xff]  ;;  %v78_v46 = vld [vmem:[#allocation5 + $0x70] sm:$0xff] }
  0x41   :  { %417 = vmatpush3.bf16.msra.mxu0 %v414_v17  ;;  %v470_v44 = vpack.c.bf16 %v179_v40, %v178_v39  ;;  %v434_v45 = vpack.c.bf16 %v77_v43, %v76_v42  ;;  %v79_v47 = vld [vmem:[#allocation5 + $0x78] sm:$0xff]  ;;  %v303_v50 = vld [vmem:[%s700_s4] ss:$0 sm:$0xff]  ;;  %s587_s4 = smov [#allocation8]  }
  0x42   :  { %453 = vmatpush3.bf16.msra.mxu1 %v450_v9  ;;  %419 = vmatprep.subr.bf16.mxu0 %v418_v23  ;;  %v438_v48 = vpack.c.bf16 %v79_v47, %v78_v46  ;;  %v63_v49 = vld [vmem:[#allocation2 + $0x8] sm:$0xff]  ;;  %v302_v1 = vld [vmem:[%s698_s2] ss:$0 sm:$0xff]  ;;  %s289_s9 = sshll.u32 %s587_s4, 4  ;;  %s290_s9 = int_to_ptr.vmem [resolvable:$true] %s289_s9 }
  0x43   :  { %455 = vmatprep.subr.bf16.mxu1 %v454_v20  ;;  %s554_s2 = scalar_lea.vmem %s290_s9, 256  ;;  %p559_p11 = scmp.lt.s32.totalorder %s290_s9, %s290_s9 }
  0x44   :  { %p555_p10 = scmp.ne.s32.totalorder %s290_s9, %s554_s2  ;;  %p560_p12 = scmp.lt.s32.totalorder %s554_s2, %s554_s2 }
  0x45   :  { %421 = vmatpush3.bf16.msra.mxu0 %v418_v23 }
  0x46   :  { %457 = vmatpush3.bf16.msra.mxu1 %v454_v20  ;;  %423 = vmatprep.subr.bf16.mxu0 %v422_v29  ;;  %p561_p13 = por %p560_p12, %p559_p11 }
  0x47   :  { %459 = vmatprep.subr.bf16.mxu1 %v458_v26 }
  0x48   :  { %p562_p0 = pnand %p561_p13, %p555_p10 }
  0x49   :  { %425 = vmatpush3.bf16.msra.mxu0 %v422_v29 }
  0x4a   :  { %461 = vmatpush3.bf16.msra.mxu1 %v458_v26  ;;  %427 = vmatprep.subr.bf16.mxu0 %v426_v35 }
  0x4b   :  { %463 = vmatprep.subr.bf16.mxu1 %v462_v32 }
  0x4d   :  { %429 = vmatpush3.bf16.msra.mxu0 %v426_v35 }
  0x4e   :  { %465 = vmatpush3.bf16.msra.mxu1 %v462_v32  ;;  %431 = vmatprep.subr.bf16.mxu0 %v430_v41 }
  0x4f   :  { %467 = vmatprep.subr.bf16.mxu1 %v466_v38 }
  0x51   :  { %433 = vmatpush3.bf16.msra.mxu0 %v430_v41 }
  0x52   :  { %469 = vmatpush3.bf16.msra.mxu1 %v466_v38  ;;  %435 = vmatprep.subr.bf16.mxu0 %v434_v45 }
  0x53   :  { %471 = vmatprep.subr.bf16.mxu1 %v470_v44 }
  0x55   :  { %437 = vmatpush3.bf16.msra.mxu0 %v434_v45 }
  0x56   :  { %473 = vmatpush3.bf16.msra.mxu1 %v470_v44  ;;  %439 = vmatprep.subr.bf16.mxu0 %v438_v48 }
  0x59   :  { %408 = vmatmul.mubr.f32.vlgmr.msra.gmra.mrb[0].mxu1 %v63_v49  ;;  %441 = vmatpush3.bf16.msra.mxu0 %v438_v48 }
  0x5c   :  { %373 = vmatmul.mubr.f32.vlgmr.msra.gmra.mrb[0].mxu0 %v63_v49 }
 0x12c   :  { %v409_v51 = vpop.f32.mrb[0].mxu1 }
 0x12d   :  { %v259_v52 = vadd.f32 %v409_v51, %v303_v50  ;;  %v253_v53 = vpop.f32.mrb[1].mxu1 }
 0x12e   :  { %v254_v54 = vadd.f32 %v303_v50, %v253_v53 }
 0x12f   :  { %v263_v55 = vsub.f32 0.0, %v259_v52  ;;  %v374_v58 = vpop.f32.mrb[0].mxu0 }
 0x130   :  { %v262_v56 = vsub.f32 0.0, %v254_v54  ;;  %v153_v60 = vpop.f32.mrb[1].mxu0  ;;  %v159_v2 = vadd.f32 %v374_v58, %v302_v1 }
 0x131   :  { %v266_v57 = vmul.f32 1.442695, %v263_v55  ;;  %v154_v3 = vadd.f32 %v302_v1, %v153_v60 }
 0x132   :  { %v264_v59 = vmul.f32 1.442695, %v262_v56  ;;  %v163_v4 = vmax.f32 %v159_v2, 0.0 }
 0x133   :  { %480 = vpow2.f32 %v266_v57  ;;  %v162_v5 = vmax.f32 %v154_v3, 0.0 }
 0x134   :  { %482 = vpow2.f32 %v264_v59 }
 0x13d   :  { %v481_v61 = vpop.eup %480 }
 0x13e   :  { %v483_v62 = vpop.eup %482  ;;  %v269_v63 = vadd.f32 1.0, %v481_v61 }
 0x13f   :  { %v268_v0 = vadd.f32 1.0, %v483_v62 }
 0x140   :  { %484 = vrcp.f32 %v269_v63 }
 0x141   :  { %486 = vrcp.f32 %v268_v0 }
 0x14a   :  { %v485_v6 = vpop.eup %484 }
 0x14b   :  { %v487_v7 = vpop.eup %486  ;;  %v275_v8 = vmul.f32 %v485_v6, %v163_v4  ;;  %v277_v9 = vsub.f32 1.0, %v485_v6 }
 0x14c   :  { %v274_v10 = vmul.f32 %v487_v7, %v162_v5  ;;  %v276_v11 = vsub.f32 1.0, %v487_v7 }
 0x14d   :  { %v279_v12 = vmul.f32 %v277_v9, %v63_v49 }
 0x14e   :  { %v278_v13 = vmul.f32 %v276_v11, %v670_v16 }
 0x14f   :  { %v281_v14 = vadd.f32 %v279_v12, %v275_v8 }
 0x150   :  { %v280_v15 = vadd.f32 %v278_v13, %v274_v10 }
 0x151   :  { %283 = vst [vmem:[#allocation8 + $0x8] sm:$0xff] %v281_v14 }
 0x152   :  { %282 = vst [vmem:[#allocation8] sm:$0xff] %v280_v15 }
 0x153   :  { %565 = shalt.err (!%p562_p0)
}
 0x154   :  { %s566_s12 = scalar_lea.hbm %s701_s5, 256 }
 0x155   :  { %p567_p1 = scmp.ne.s32.totalorder %s701_s5, %s566_s12  ;;  %p570_p2 = scmp.lt.u32.totalorder %s566_s12, %s701_s5 }
 0x157   :  { %p572_p3 = pnand %p570_p2, %p567_p1 }
 0x159   :  { %575 = shalt.err (!%p572_p3)
}
 0x15a   :  { %295 = dma.vmem_to_hbm [thread:$0]  %s290_s9, 256, %s701_s5, [#allocation4], %s584_s30, %s584_s30, %s585_s6  }
 0x15b   :  { %580 = dma.done.wait [#allocation4], 256  }
 0x15c   :  { %581 = vsyncadd [#allocation4], 4294967040 }
 0x15d   :  { %299 = vsyncpa [#allocation3], 1 }
 0x15e   :  { %300 = vsyncpa [#allocation6], 1 }
 0x15f   :  { %301 = vsyncpa [#allocation4], 1 }

</bundles_post_ra>
